<compile_context>
chip_gen: v7x
topology: tpu7x:2x2x1
jax: 0.10.0
libtpu: 0.0.40
codegen_flags: <defaults>
</compile_context>

<pallas_src>
import math

import jax
import jax.numpy as jnp
from jax.experimental import pallas as pl
from jax.experimental.pallas import tpu as pltpu


def _make_outnet_kernel(S, H, F1):
    """Kernel closure over the (static) feature dims."""

    def kernel(g_ref, ctx_ref, mask_ref, w1_ref, consts_ref, o_ref):
        g = g_ref[...]                       # (TB, F1)
        ctx = ctx_ref[...]                   # (S, TB, H)   — original layout
        msk = mask_ref[...] != 0             # (S, TB) bool, True == masked

        # Packed resident constants: row0=b1, row1=W2[:H], row2=W2[H:], row3=b2.
        b1 = consts_ref[0:1, :H]             # (1, H)
        w2v = consts_ref[1:2, :H]            # (1, H)
        w2g = consts_ref[2:3, :F1]           # (1, F1)
        b2 = consts_ref[3:4, 0:1]            # (1, 1)

        # q = tanh(g @ W1 + b1)   (tiny MXU dot, fp32 accumulate; EUP tanh)
        q = jnp.tanh(jnp.dot(g, w1_ref[...],
                             preferred_element_type=jnp.float32) + b1)  # (TB, H)

        # attention scores in the (S, TB) domain — no transposes anywhere.
        scores = jnp.sum(ctx * q[None, :, :], axis=-1)          # (S, TB)
        scores = jnp.where(msk, -jnp.inf, scores)

        # masked softmax over the sequence axis (axis 0).
        # NOTE: a fully-masked row gives NaN, same as torch masked_fill(-inf).
        m = jnp.max(scores, axis=0, keepdims=True)               # (1, TB)
        p = jnp.exp(scores - m)
        att = p / jnp.sum(p, axis=0, keepdims=True)
        att = jnp.where(msk, 0.0, att)                           # masked_fill(mask, 0)

        # weighted context sum: values[b, :] = sum_s att[s, b] * ctx[s, b, :]
        values = jnp.sum(att[:, :, None] * ctx, axis=0)          # (TB, H)

        # final Linear over cat([values, g]) as two lane reductions (no concat).
        out = (jnp.sum(values * w2v, axis=-1, keepdims=True)
               + jnp.sum(g * w2g, axis=-1, keepdims=True)
               + b2)                                             # (TB, 1)
        o_ref[...] = out

    return kernel


def _pick_batch_tile(B):
    """Small B: single exact tile.  Large B: >= 2 tiles (both v7x cores run),
    128-lane-aligned, capped at 1024 rows (double-buffered ctx tile ~8 MiB)."""
    if B <= 256:
        return B
    half = -(-B // 2)                 # ceil(B / 2)
    half = -(-half // 128) * 128      # round up to a multiple of 128
    return min(1024, half)


def outnet_forward(global_feature, context_sbh, mask, params):
    """global_feature: (B, F1); context_sbh: (S, B, H); mask: (B, S) bool."""
    B, F1 = global_feature.shape
    S, B2, H = context_sbh.shape
    assert B2 == B and mask.shape == (B, S)

    # Pack the four tiny constants into one resident (8, C) tile (C >= 128).
    C = ((max(H, F1, 1) + 127) // 128) * 128
    w2 = params["w2"].astype(jnp.float32)                 # (H + F1, 1)
    consts = jnp.zeros((8, C), jnp.float32)
    consts = consts.at[0, :H].set(params["b1"].reshape(H).astype(jnp.float32))
    consts = consts.at[1, :H].set(w2[:H, 0])
    consts = consts.at[2, :F1].set(w2[H:, 0])
    consts = consts.at[3, 0].set(params["b2"].reshape(()).astype(jnp.float32))

    TB = _pick_batch_tile(B)
    grid = (pl.cdiv(B, TB),)

    kernel = _make_outnet_kernel(S, H, F1)

    return pl.pallas_call(
        kernel,
        out_shape=jax.ShapeDtypeStruct((B, 1), jnp.float32),
        grid=grid,
        in_specs=[
            pl.BlockSpec((TB, F1), lambda i: (i, 0)),        # global feature
            pl.BlockSpec((S, TB, H), lambda i: (0, i, 0)),   # context (S,B,H), NO transpose
            pl.BlockSpec((S, TB), lambda i: (0, i)),         # mask (S,B) int32
            pl.BlockSpec((F1, H), lambda i: (0, 0)),         # W1 (resident)
            pl.BlockSpec((8, C), lambda i: (0, 0)),          # packed consts (resident)
        ],
        out_specs=pl.BlockSpec((TB, 1), lambda i: (i, 0)),
        compiler_params=pltpu.CompilerParams(
            dimension_semantics=("parallel",),
            vmem_limit_bytes=32 * 1024 * 1024),
    )(global_feature.astype(jnp.float32),
      context_sbh.astype(jnp.float32),
      jnp.transpose(mask).astype(jnp.int32),   # tiny (S, B) int32, negligible
      params["w1"].astype(jnp.float32),
      consts)


def make_params(key, in_feature_1, gru_hidden):
    """Deterministic Linear-style init (U(-1/sqrt(fan_in), 1/sqrt(fan_in)))."""
    k1, k2, k3, k4 = jax.random.split(key, 4)
    s1 = 1.0 / math.sqrt(in_feature_1)
    s2 = 1.0 / math.sqrt(in_feature_1 + gru_hidden)
    w1 = jax.random.uniform(k1, (in_feature_1, gru_hidden),
                            jnp.float32, -s1, s1)
    b1 = jax.random.uniform(k2, (gru_hidden,), jnp.float32, -s1, s1)
    w2 = jax.random.uniform(k3, (gru_hidden + in_feature_1, 1),
                            jnp.float32, -s2, s2)
    b2 = jax.random.uniform(k4, (1,), jnp.float32, -s2, s2)
    return {"w1": w1, "b1": b1, "w2": w2, "b2": b2}


def outnet_reference(global_feature, context_sbh, mask, params):
    """Pure-JAX reference mirroring the PyTorch OutNet/MCLB forward exactly."""
    ctx = jnp.transpose(context_sbh, (1, 0, 2))                  # (B, S, H)
    q = jnp.tanh(global_feature @ params["w1"] + params["b1"])   # (B, H)
    scores = jnp.einsum("bsh,bh->bs", ctx, q)                    # (B, S)
    scores = jnp.where(mask, -jnp.inf, scores)
    att = jax.nn.softmax(scores, axis=-1)
    att = jnp.where(mask, 0.0, att)
    values = jnp.einsum("bs,bsh->bh", att, ctx)                  # (B, H)
    x = jnp.concatenate([values, global_feature], axis=1)        # (B, H + F1)
    return x @ params["w2"] + params["b2"]                       # (B, 1)


if __name__ == "__main__":
    B, F1, H, S = 2, 4, 32, 8   # batch, in_feature_1, gru_hidden, seq len

    key = jax.random.PRNGKey(0)
    kg, ks, kp = jax.random.split(key, 3)

    global_feature = jax.random.normal(kg, (B, F1), dtype=jnp.float32)
    # seq_out_list: list of per-step seqnet outputs, each (1, B, H); cat(dim=0)
    seq_out_list = [jax.random.normal(jax.random.fold_in(ks, s), (1, B, H),
                                      dtype=jnp.float32) for s in range(S)]
    context_sbh = jnp.concatenate(seq_out_list, axis=0)          # (S, B, H)

    # Padding-style mask: True == masked position (no fully masked row).
    lengths = jnp.array([S, S - 3], dtype=jnp.int32)
    mask = jnp.arange(S)[None, :] >= lengths[:, None]            # (B, S) bool

    params = make_params(kp, F1, H)

    out = outnet_forward(global_feature, context_sbh, mask, params)
    out = jax.block_until_ready(out)

    ref = outnet_reference(global_feature, context_sbh, mask, params)
    assert out.shape == (B, 1)
    assert jnp.allclose(out, ref, atol=1e-5, rtol=1e-5), (out, ref)

    print("KERNEL_OK")
</pallas_src>

<mosaic_0001>
module attributes {stable_mosaic.version = 11 : i64} {
  func.func @kernel(%arg0: i32, %arg1: memref<2x4xf32, #tpu.memory_space<vmem>>, %arg2: memref<8x2x32xf32, #tpu.memory_space<vmem>>, %arg3: memref<8x2xi32, #tpu.memory_space<vmem>>, %arg4: memref<4x32xf32, #tpu.memory_space<vmem>>, %arg5: memref<8x128xf32, #tpu.memory_space<vmem>>, %arg6: memref<2x1xf32, #tpu.memory_space<vmem>>) attributes {dimension_semantics = [#tpu.dimension_semantics<parallel>], iteration_bounds = array<i64: 1>, scalar_prefetch = 0 : i64, scratch_operands = 0 : i64, tpu.core_type = #tpu.core_type<tc>, window_params = [{transform_indices = @transform_0, window_bounds = array<i64: 2, 4>}, {transform_indices = @transform_1, window_bounds = array<i64: 8, 2, 32>}, {transform_indices = @transform_2, window_bounds = array<i64: 8, 2>}, {pipeline_mode = #tpu.pipeline_mode<synchronous>, transform_indices = @transform_3, window_bounds = array<i64: 4, 32>}, {pipeline_mode = #tpu.pipeline_mode<synchronous>, transform_indices = @transform_4, window_bounds = array<i64: 8, 128>}, {transform_indices = @transform_5, window_bounds = array<i64: 2, 1>}]} {
    %c0 = arith.constant 0 : index
    %c0_0 = arith.constant 0 : index
    %0 = vector.load %arg1[%c0, %c0_0] : memref<2x4xf32, #tpu.memory_space<vmem>>, vector<2x4xf32>
    %c0_1 = arith.constant 0 : index
    %c0_2 = arith.constant 0 : index
    %c0_3 = arith.constant 0 : index
    %1 = vector.load %arg2[%c0_1, %c0_2, %c0_3] : memref<8x2x32xf32, #tpu.memory_space<vmem>>, vector<8x2x32xf32>
    %c0_4 = arith.constant 0 : index
    %c0_5 = arith.constant 0 : index
    %2 = vector.load %arg3[%c0_4, %c0_5] : memref<8x2xi32, #tpu.memory_space<vmem>>, vector<8x2xi32>
    %c0_i32 = arith.constant 0 : i32
    %3 = vector.broadcast %c0_i32 : i32 to vector<8x2xi32>
    %4 = arith.cmpi ne, %2, %3 : vector<8x2xi32>
    %c0_6 = arith.constant 0 : index
    %c0_7 = arith.constant 0 : index
    %5 = vector.load %arg5[%c0_6, %c0_7] : memref<8x128xf32, #tpu.memory_space<vmem>>, vector<1x32xf32>
    %c1 = arith.constant 1 : index
    %c0_8 = arith.constant 0 : index
    %6 = vector.load %arg5[%c1, %c0_8] : memref<8x128xf32, #tpu.memory_space<vmem>>, vector<1x32xf32>
    %c2 = arith.constant 2 : index
    %c0_9 = arith.constant 0 : index
    %7 = vector.load %arg5[%c2, %c0_9] : memref<8x128xf32, #tpu.memory_space<vmem>>, vector<1x4xf32>
    %c3 = arith.constant 3 : index
    %c0_10 = arith.constant 0 : index
    %8 = vector.load %arg5[%c3, %c0_10] : memref<8x128xf32, #tpu.memory_space<vmem>>, vector<1x1xf32>
    %c0_11 = arith.constant 0 : index
    %c0_12 = arith.constant 0 : index
    %9 = vector.load %arg4[%c0_11, %c0_12] : memref<4x32xf32, #tpu.memory_space<vmem>>, vector<4x32xf32>
    %cst = arith.constant dense<0.000000e+00> : vector<2x32xf32>
    %10 = tpu.matmul %0, %9, %cst {dimension_numbers = #tpu.dot_dimension_numbers<[1], [0], [0], [1], [0, 0, 1, 1], [], []>} : vector<2x4xf32>, vector<4x32xf32>, vector<2x32xf32> -> vector<2x32xf32>
    %11 = vector.broadcast %5 : vector<1x32xf32> to vector<2x32xf32>
    %12 = arith.addf %10, %11 : vector<2x32xf32>
    %13 = math.tanh %12 : vector<2x32xf32>
    %14 = vector.shape_cast %13 : vector<2x32xf32> to vector<1x2x32xf32>
    %15 = vector.broadcast %14 : vector<1x2x32xf32> to vector<8x2x32xf32>
    %16 = arith.mulf %1, %15 : vector<8x2x32xf32>
    %cst_13 = arith.constant dense<0.000000e+00> : vector<8x2xf32>
    %17 = vector.multi_reduction <add>, %16, %cst_13 [2] : vector<8x2x32xf32> to vector<8x2xf32>
    %cst_14 = arith.constant 0xFF800000 : f32
    %18 = vector.broadcast %cst_14 : f32 to vector<8x2xf32>
    %19 = arith.select %4, %18, %17 : vector<8x2xi1>, vector<8x2xf32>
    %cst_15 = arith.constant dense<0xFF800000> : vector<2xf32>
    %20 = vector.multi_reduction <maximumf>, %19, %cst_15 [0] : vector<8x2xf32> to vector<2xf32>
    %21 = vector.shape_cast %20 : vector<2xf32> to vector<1x2xf32>
    %22 = vector.broadcast %21 : vector<1x2xf32> to vector<8x2xf32>
    %23 = arith.subf %19, %22 : vector<8x2xf32>
    %24 = math.exp %23 : vector<8x2xf32>
    %cst_16 = arith.constant dense<0.000000e+00> : vector<2xf32>
    %25 = vector.multi_reduction <add>, %24, %cst_16 [0] : vector<8x2xf32> to vector<2xf32>
    %26 = vector.shape_cast %25 : vector<2xf32> to vector<1x2xf32>
    %27 = vector.broadcast %26 : vector<1x2xf32> to vector<8x2xf32>
    %28 = arith.divf %24, %27 : vector<8x2xf32>
    %cst_17 = arith.constant 0.000000e+00 : f32
    %29 = vector.broadcast %cst_17 : f32 to vector<8x2xf32>
    %30 = arith.select %4, %29, %28 : vector<8x2xi1>, vector<8x2xf32>
    %31 = vector.shape_cast %30 : vector<8x2xf32> to vector<8x2x1xf32>
    %32 = vector.broadcast %31 : vector<8x2x1xf32> to vector<8x2x32xf32>
    %33 = arith.mulf %32, %1 : vector<8x2x32xf32>
    %cst_18 = arith.constant dense<0.000000e+00> : vector<2x32xf32>
    %34 = vector.multi_reduction <add>, %33, %cst_18 [0] : vector<8x2x32xf32> to vector<2x32xf32>
    %35 = vector.broadcast %6 : vector<1x32xf32> to vector<2x32xf32>
    %36 = arith.mulf %34, %35 : vector<2x32xf32>
    %cst_19 = arith.constant dense<0.000000e+00> : vector<2xf32>
    %37 = vector.multi_reduction <add>, %36, %cst_19 [1] : vector<2x32xf32> to vector<2xf32>
    %38 = vector.shape_cast %37 : vector<2xf32> to vector<2x1xf32>
    %39 = vector.broadcast %7 : vector<1x4xf32> to vector<2x4xf32>
    %40 = arith.mulf %0, %39 : vector<2x4xf32>
    %cst_20 = arith.constant dense<0.000000e+00> : vector<2xf32>
    %41 = vector.multi_reduction <add>, %40, %cst_20 [1] : vector<2x4xf32> to vector<2xf32>
    %42 = vector.shape_cast %41 : vector<2xf32> to vector<2x1xf32>
    %43 = arith.addf %38, %42 : vector<2x1xf32>
    %44 = vector.broadcast %8 : vector<1x1xf32> to vector<2x1xf32>
    %45 = arith.addf %43, %44 : vector<2x1xf32>
    %c0_21 = arith.constant 0 : index
    %c0_22 = arith.constant 0 : index
    %46 = vector.load %arg6[%c0_21, %c0_22] : memref<2x1xf32, #tpu.memory_space<vmem>>, vector<2x1xf32>
    tpu.vector_store %arg6[%c0_21, %c0_22], %45 {strides = array<i32>} : memref<2x1xf32, #tpu.memory_space<vmem>>, vector<2x1xf32>,
    return
  }
  func.func @transform_0(%arg0: i32) -> (i32, i32) {
    %c0_i32 = arith.constant 0 : i32
    %c0_i32_0 = arith.constant 0 : i32
    return %arg0, %c0_i32 : i32, i32
  }
  func.func @transform_1(%arg0: i32) -> (i32, i32, i32) {
    %c0_i32 = arith.constant 0 : i32
    %c0_i32_0 = arith.constant 0 : i32
    %c0_i32_1 = arith.constant 0 : i32
    return %c0_i32, %arg0, %c0_i32_0 : i32, i32, i32
  }
  func.func @transform_2(%arg0: i32) -> (i32, i32) {
    %c0_i32 = arith.constant 0 : i32
    %c0_i32_0 = arith.constant 0 : i32
    return %c0_i32, %arg0 : i32, i32
  }
  func.func @transform_3(%arg0: i32) -> (i32, i32) {
    %c0_i32 = arith.constant 0 : i32
    %c0_i32_0 = arith.constant 0 : i32
    %c0_i32_1 = arith.constant 0 : i32
    return %c0_i32, %c0_i32_0 : i32, i32
  }
  func.func @transform_4(%arg0: i32) -> (i32, i32) {
    %c0_i32 = arith.constant 0 : i32
    %c0_i32_0 = arith.constant 0 : i32
    %c0_i32_1 = arith.constant 0 : i32
    return %c0_i32, %c0_i32_0 : i32, i32
  }
  func.func @transform_5(%arg0: i32) -> (i32, i32) {
    %c0_i32 = arith.constant 0 : i32
    %c0_i32_0 = arith.constant 0 : i32
    return %arg0, %c0_i32 : i32, i32
  }
}

</mosaic_0001>

<bundles_post_ra>
// kernel: tpu_custom_call.1
= control target key start
LH: loop header
LB: loop body
LE: loop exit
PB: predicated region body
PF: predicated region fallthrough
CT: control target
= control target key end

     0   :  { %10 = vsyncpa [#allocation3], 0  ;;  %s402_s18 = smov [#allocation2]   ;;  %s539_s0 = inlined_call_operand.vmem [shape: f32[2,4], index: 0, kind: input, shape index: {}]   ;;  %s540_s1 = inlined_call_operand.hbm [shape: f32[8,2,32], index: 1, kind: input, shape index: {}]   ;;  %s541_s2 = inlined_call_operand.vmem [shape: s32[8,2], index: 2, kind: input, shape index: {}]   ;;  %s542_s3 = inlined_call_operand.vmem [shape: f32[4,32], index: 3, kind: input, shape index: {}]   ;;  %s543_s4 = inlined_call_operand.vmem [shape: f32[8,128], index: 4, kind: input, shape index: {}]   ;;  %s544_s5 = inlined_call_operand.vmem [shape: f32[2,1], index: 5, kind: output, shape index: {}]  }
   0x1   :  { %s18_s19 = sshll.u32 %s402_s18, 4  ;;  %s378_s22 = scalar_lea.hbm %s540_s1, 256  ;;  %s19_s19 = int_to_ptr.vmem [resolvable:$true] %s18_s19 }
   0x2   :  { %p379_p0 = scmp.ne.s32.totalorder %s540_s1, %s378_s22  ;;  %p382_p1 = scmp.lt.u32.totalorder %s378_s22, %s540_s1 }
   0x4   :  { %p384_p2 = pnand %p382_p1, %p379_p0 }
   0x6   :  { %387 = shalt.err (!%p384_p2)
}
   0x7   :  { %s388_s27 = scalar_lea.vmem %s19_s19, 256  ;;  %p393_p4 = scmp.lt.s32.totalorder %s19_s19, %s19_s19 }
   0x8   :  { %p389_p3 = scmp.ne.s32.totalorder %s19_s19, %s388_s27  ;;  %p394_p5 = scmp.lt.s32.totalorder %s388_s27, %s388_s27 }
   0xa   :  { %p395_p6 = por %p394_p5, %p393_p4 }
   0xc   :  { %p396_p7 = pnand %p395_p6, %p389_p3 }
   0xe   :  { %399 = shalt.err (!%p396_p7)
}
   0xf   :  { %s403_s28 = smov 32   ;;  %s404_s29 = smov 2  }
  0x10   :  { %24 = dma.hbm_to_vmem [thread:$0]  %s540_s1, 256, %s19_s19, [#allocation3], %s403_s28, %s403_s28, %s404_s29  }
  0x11   :  { %400 = dma.done.wait [#allocation3], 256  }
  0x12   :  { %401 = vsyncadd [#allocation3], 4294967040  ;;  %v405_v0 = vmov 0.0   ;;  %vm406_vm0 = vmmov 0   ;;  %vm58_vm1 = vcmask 1043456   ;;  %vm54_vm2 = vcmask 31744  }
  0x13   :  { %362 = vmatprep.subr.mxu0 %v405_v0  ;;  %364 = vmatprep.mubr.msk.f32.mxu0 %vm406_vm0, %v405_v0  ;;  %v49_v1 = vld [vmem:[%s542_s3] sm:$0xf]  ;;  %v461_v7 = vld [vmem:[#allocation2 + $0x4] sm:$0x3]  ;;  %vm141_vm3 = vcmask 254976   ;;  %v174_v32 = vlaneseq  ;;  %vm208_vm4 = vcmask 1041409  }
  0x14   :  { %v455_v2 = vld [vmem:[%s539_s0] sm:$0x3]  ;;  %363 = vmatpush3.msk.msra.mxu0 %vm58_vm1, %v49_v1  ;;  %v465_v10 = vld [vmem:[#allocation2 + $0x6] sm:$0x3]  ;;  %v467_v11 = vld [vmem:[#allocation2 + $0x2] sm:$0x3] }
  0x15   :  { %365 = vmatmul.mubr.msk.f32.vlgmr.msra.gmra.mrb[0].mxu0 %vm54_vm2, %v455_v2  ;;  %v354_v3 = vld [vmem:[%s543_s4] ss:$0 sm:$0xff]  ;;  %v475_v18 = vld [vmem:[#allocation2 + $0xa] sm:$0x3]  ;;  %v477_v19 = vld [vmem:[#allocation2 + $0x8] sm:$0x3] }
  0x16   :  { %v463_v8 = vld [vmem:[#allocation2] sm:$0x3]  ;;  %v483_v24 = vld [vmem:[#allocation2 + $0xe] sm:$0x3]  ;;  %v485_v25 = vld [vmem:[#allocation2 + $0xc] sm:$0x3] }
  0x17   :  { %v175_v33 = vand.u32 127, %v174_v32  ;;  %v493_v34 = vshrl.u32 %v174_v32, 7  ;;  %vm210_vm5 = vcmask 1042434   ;;  %vm212_vm6 = vcmask 1043459   ;;  %v43_v52 = vld [vmem:[%s541_s2] sm:$0xff] }
  0x18   :  { %vm214_vm7 = vcmask 1044484   ;;  %vm216_vm8 = vcmask 1045509   ;;  %vm218_vm9 = vcmask 1046534   ;;  %vm220_vm10 = vcmask 1047559  }
  0x19   :  { %v178_v37 = vsub.s32 %v175_v33, %v493_v34  ;;  %vm44_vm11 = vcmp.ne.s32.totalorder %v43_v52, 0  ;;  %vm224_vm12 = vcmask 15360   ;;  %vm337_vm13 = vcmask 25600  }
  0x1a   :  { %vm347_vm14 = vcmask 1024  }
  0xe8   :  { %v128_v4 = vpop.f32.mrb[0].mxu0 }
  0xe9   :  { %v129_v5 = vadd.f32 %v354_v3, %v128_v4  ;;  %v366_v6 = vpop.f32.mrb[1].mxu0 }
  0xeb   :  { %372 = vtanh.f32 %v129_v5 }
  0xf5   :  { %v373_v9 = vpop.eup %372 }
  0xf6   :  { %v135_v12 = vmul.f32 %v373_v9, %v461_v7  ;;  %v133_v13 = vmul.f32 %v373_v9, %v463_v8  ;;  %v136_v16 = vmul.f32 %v373_v9, %v465_v10  ;;  %v134_v17 = vmul.f32 %v373_v9, %v467_v11 }
  0xf7   :  { %v138_v22 = vmul.f32 %v373_v9, %v475_v18  ;;  %v137_v23 = vmul.f32 %v373_v9, %v477_v19  ;;  %v140_v28 = vmul.f32 %v373_v9, %v483_v24  ;;  %v139_v29 = vmul.f32 %v373_v9, %v485_v25 }
  0xf8   :  { %v148_v14 = vsel %vm141_vm3, %v135_v12, 0.0  ;;  %v142_v15 = vsel %vm141_vm3, %v133_v13, 0.0  ;;  %v151_v20 = vsel %vm141_vm3, %v136_v16, 0.0  ;;  %v145_v21 = vsel %vm141_vm3, %v134_v17, 0.0 }
  0xf9   :  { %149 = vadd.xlane.f32.xlu1 %v148_v14  ;;  %143 = vadd.xlane.f32.xlu0 %v142_v15  ;;  %v157_v26 = vsel %vm141_vm3, %v138_v22, 0.0  ;;  %v154_v27 = vsel %vm141_vm3, %v137_v23, 0.0  ;;  %v163_v30 = vsel %vm141_vm3, %v140_v28, 0.0  ;;  %v160_v31 = vsel %vm141_vm3, %v139_v29, 0.0 }
  0xfa   :  { %v254_v22 = vsub.s32 1, %v493_v34  ;;  %v247_v23 = vsub.s32 0, %v493_v34 }
  0xfd   :  { %152 = vadd.xlane.f32.xlu1 %v151_v20  ;;  %146 = vadd.xlane.f32.xlu0 %v145_v21 }
 0x101   :  { %158 = vadd.xlane.f32.xlu1 %v157_v26  ;;  %155 = vadd.xlane.f32.xlu0 %v154_v27 }
 0x105   :  { %164 = vadd.xlane.f32.xlu1 %v163_v30  ;;  %161 = vadd.xlane.f32.xlu0 %v160_v31  ;;  %v261_v30 = vsub.s32 2, %v493_v34  ;;  %v275_v31 = vsub.s32 4, %v493_v34 }
 0x186   :  { %v150_v35 = vpop.xlane.xlu1 %149  ;;  %v144_v36 = vpop.xlane.xlu0 %143 }
 0x187   :  { %v179_v40 = vrot.slane %v144_v36, %v178_v37  ;;  %v187_v42 = vrot.slane %v150_v35, %v178_v37  ;;  %v268_v35 = vsub.s32 3, %v493_v34  ;;  %v289_v36 = vsub.s32 6, %v493_v34 }
 0x18a   :  { %v153_v38 = vpop.xlane.xlu1 %152  ;;  %v147_v39 = vpop.xlane.xlu0 %146 }
 0x18b   :  { %v183_v41 = vrot.slane %v147_v39, %v178_v37  ;;  %v191_v43 = vrot.slane %v153_v38, %v178_v37  ;;  %v282_v39 = vsub.s32 5, %v493_v34 }
 0x18d   :  { %v209_v44 = vsel %vm208_vm4, %v183_v41, %v179_v40  ;;  %v296_v41 = vsub.s32 7, %v493_v34 }
 0x18e   :  { %v211_v45 = vsel %vm210_vm5, %v187_v42, %v209_v44  ;;  %v159_v46 = vpop.xlane.xlu1 %158  ;;  %v156_v47 = vpop.xlane.xlu0 %155 }
 0x18f   :  { %v213_v48 = vsel %vm212_vm6, %v191_v43, %v211_v45  ;;  %v195_v49 = vrot.slane %v156_v47, %v178_v37  ;;  %v199_v50 = vrot.slane %v159_v46, %v178_v37  ;;  %v358_v43 = vld [vmem:[%s543_s4 + $0x2] ss:$0 sm:$0xff] }
 0x190   :  { %v336_v44 = vmul.f32 %v358_v43, %v455_v2 }
 0x191   :  { %v215_v51 = vsel %vm214_vm7, %v195_v49, %v213_v48 }
 0x192   :  { %v165_v53 = vpop.xlane.xlu1 %164  ;;  %v162_v54 = vpop.xlane.xlu0 %161  ;;  %v217_v57 = vsel %vm216_vm8, %v199_v50, %v215_v51  ;;  %v338_v45 = vsel %vm337_vm13, %v336_v44, 0.0 }
 0x193   :  { %v207_v55 = vrot.slane %v165_v53, %v178_v37  ;;  %v203_v56 = vrot.slane %v162_v54, %v178_v37 }
 0x195   :  { %v219_v58 = vsel %vm218_vm9, %v203_v56, %v217_v57 }
 0x196   :  { %v221_v59 = vsel %vm220_vm10, %v207_v55, %v219_v58 }
 0x197   :  { %v223_v60 = vsel %vm44_vm11, -inf, %v221_v59 }
 0x198   :  { %v225_v61 = vsel %vm224_vm12, %v223_v60, -inf }
 0x199   :  { %v226_v62 = vrot.slane %v225_v61, 4 }
 0x19b   :  { %v227_v63 = vmax.f32 %v225_v61, %v226_v62 }
 0x19d   :  { %v228_v0 = vrot.slane %v227_v63, 2 }
 0x19f   :  { %v229_v1 = vmax.f32 %v227_v63, %v228_v0 }
 0x1a1   :  { %v230_v3 = vrot.slane %v229_v1, 1 }
 0x1a3   :  { %v231_v4 = vmax.f32 %v229_v1, %v230_v3 }
 0x1a5   :  { %v232_v5 = vsub.f32 %v223_v60, %v231_v4 }
 0x1a7   :  { %v233_v6 = vmul.f32 1.442695, %v232_v5 }
 0x1a9   :  { %374 = vpow2.f32 %v233_v6  ;;  %v357_v6 = vld [vmem:[%s543_s4 + $0x1] ss:$0 sm:$0xff] }
 0x1b3   :  { %v375_v9 = vpop.eup %374 }
 0x1b4   :  { %v235_v12 = vsel %vm224_vm12, %v375_v9, 0.0 }
 0x1b5   :  { %v236_v13 = vrot.slane %v235_v12, 4 }
 0x1b7   :  { %v237_v14 = vadd.f32 %v236_v13, %v235_v12  ;;  %v359_v13 = vld [vmem:[%s543_s4 + $0x3] ss:$0 sm:$0xff] }
 0x1b9   :  { %v238_v15 = vrot.slane %v237_v14, 2 }
 0x1bb   :  { %v239_v16 = vadd.f32 %v238_v15, %v237_v14 }
 0x1bd   :  { %v240_v17 = vrot.slane %v239_v16, 1 }
 0x1bf   :  { %v241_v20 = vadd.f32 %v240_v17, %v239_v16 }
 0x1c1   :  { %376 = vrcp.f32 %v241_v20 }
 0x1cb   :  { %v377_v21 = vpop.eup %376 }
 0x1cc   :  { %v243_v26 = vmul.f32 %v377_v21, %v375_v9 }
 0x1ce   :  { %v244_v27 = vsel %vm44_vm11, 0.0, %v243_v26 }
 0x1cf   :  { %v255_v28 = vrot.slane %v244_v27, %v254_v22  ;;  %v248_v29 = vrot.slane %v244_v27, %v247_v23  ;;  %v262_v32 = vrot.slane %v244_v27, %v261_v30  ;;  %v276_v33 = vrot.slane %v244_v27, %v275_v31 }
 0x1d0   :  { %v269_v37 = vrot.slane %v244_v27, %v268_v35  ;;  %v290_v38 = vrot.slane %v244_v27, %v289_v36  ;;  %v283_v40 = vrot.slane %v244_v27, %v282_v39  ;;  %v297_v42 = vrot.slane %v244_v27, %v296_v41 }
 0x1d1   :  { %257 = vbcast.lane.b32.xlu1 %v255_v28, 256  ;;  %250 = vbcast.lane.b32.xlu0 %v248_v29, 256 }
 0x1d5   :  { %264 = vbcast.lane.b32.xlu1 %v262_v32, 256  ;;  %278 = vbcast.lane.b32.xlu0 %v276_v33, 256 }
 0x1d9   :  { %271 = vbcast.lane.b32.xlu1 %v269_v37, 256  ;;  %292 = vbcast.lane.b32.xlu0 %v290_v38, 256 }
 0x1dd   :  { %285 = vbcast.lane.b32.xlu1 %v283_v40, 256 }
 0x1e1   :  { %299 = vbcast.lane.b32.xlu1 %v297_v42, 256 }
 0x205   :  { %339 = vadd.xlane.f32.xlu1 %v338_v45 }
 0x243   :  { %v258_v46 = vpop.permute.xlu1 %257  ;;  %v251_v47 = vpop.permute.xlu0 %250 }
 0x244   :  { %v302_v48 = vmul.f32 %v258_v46, %v467_v11  ;;  %v301_v49 = vmul.f32 %v251_v47, %v463_v8 }
 0x246   :  { %v310_v51 = vsel %vm141_vm3, %v302_v48, 0.0  ;;  %v309_v52 = vsel %vm141_vm3, %v301_v49, 0.0 }
 0x247   :  { %v265_v50 = vpop.permute.xlu1 %264  ;;  %v279_v34 = vpop.permute.xlu0 %278  ;;  %v311_v2 = vadd.f32 %v310_v51, %v309_v52 }
 0x248   :  { %v303_v53 = vmul.f32 %v265_v50, %v461_v7  ;;  %v305_v56 = vmul.f32 %v279_v34, %v477_v19 }
 0x24a   :  { %v312_v54 = vsel %vm141_vm3, %v303_v53, 0.0  ;;  %v316_v61 = vsel %vm141_vm3, %v305_v56, 0.0 }
 0x24b   :  { %v272_v55 = vpop.permute.xlu1 %271  ;;  %v313_v58 = vadd.f32 %v312_v54, %v311_v2  ;;  %v293_v11 = vpop.permute.xlu0 %292 }
 0x24c   :  { %v304_v57 = vmul.f32 %v272_v55, %v465_v10  ;;  %v307_v62 = vmul.f32 %v293_v11, %v485_v25 }
 0x24e   :  { %v314_v8 = vsel %vm141_vm3, %v304_v57, 0.0  ;;  %v320_v19 = vsel %vm141_vm3, %v307_v62, 0.0 }
 0x24f   :  { %v315_v59 = vadd.f32 %v314_v8, %v313_v58  ;;  %v286_v60 = vpop.permute.xlu1 %285 }
 0x250   :  { %v306_v7 = vmul.f32 %v286_v60, %v475_v18 }
 0x251   :  { %v317_v63 = vadd.f32 %v316_v61, %v315_v59 }
 0x252   :  { %v318_v0 = vsel %vm141_vm3, %v306_v7, 0.0 }
 0x253   :  { %v319_v1 = vadd.f32 %v318_v0, %v317_v63  ;;  %v300_v3 = vpop.permute.xlu1 %299 }
 0x254   :  { %v308_v10 = vmul.f32 %v300_v3, %v483_v24 }
 0x255   :  { %v321_v4 = vadd.f32 %v320_v19, %v319_v1 }
 0x256   :  { %v322_v5 = vsel %vm141_vm3, %v308_v10, 0.0 }
 0x257   :  { %v323_v9 = vadd.f32 %v322_v5, %v321_v4 }
 0x259   :  { %v328_v25 = vmul.f32 %v357_v6, %v323_v9 }
 0x25b   :  { %v329_v18 = vsel %vm141_vm3, %v328_v25, 0.0 }
 0x25c   :  { %330 = vadd.xlane.f32.xlu0 %v329_v18 }
 0x292   :  { %v340_v12 = vpop.xlane.xlu1 %339 }
 0x2e9   :  { %v331_v14 = vpop.xlane.xlu0 %330 }
 0x2ea   :  { %v341_v15 = vadd.f32 %v340_v12, %v331_v14 }
 0x2ec   :  { %v346_v24 = vadd.f32 %v359_v13, %v341_v15 }
 0x2ee   :  { %348 = vst.msk [vmem:[%s544_s5] sm:$0x3] %vm347_vm14, %v346_v24 }
 0x2ef   :  { %353 = vsyncpa [#allocation3], 1 }

</bundles_post_ra>
